<compile_context>
chip_gen: v7x
topology: tpu7x:2x2x1
jax: 0.10.0
libtpu: 0.0.40
codegen_flags: <defaults>
</compile_context>

<pallas_src>
import functools

import jax
import jax.numpy as jnp
from jax.experimental import pallas as pl
from jax.experimental.pallas import tpu as pltpu


def _bottleneck_kernel(x_ref, s1_ref, b1_ref, w1_ref, b2_ref, w2_ref, cmask_ref,
                       o_ref, patches_ref, *, H, W, INTER):
    # x_ref:    (1, C, H*W)            x channels of the wide DenseNet buffer (flat NCHW)
    # s1/b1:    (C, 1)                 folded BN1 scale / bias (broadcast over lanes)
    # w1:       (INTER, C)      bf16   1x1 conv weight with BN2 scale folded in
    # b2:       (INTER, 1)             folded BN2 bias
    # w2:       (GROWTH, 9*INTER) bf16 3x3 conv weight, tap-major / channel-minor
    # cmask:    (2, H*W)        f32    precomputed left / right column edge masks
    # o_ref:    (1, GROWTH, H*W)       new channels only, written in place at offset C
    # patches:  (9*INTER, H*W)  bf16   VMEM scratch holding the im2col operand
    HW = H * W
    x = x_ref[0]                                                      # (C, HW) f32

    # ---- BN1 + ReLU (VPU); cast to bf16 for the MXU ----
    h1 = jnp.maximum(x * s1_ref[...] + b1_ref[...], 0.0).astype(jnp.bfloat16)

    # ---- 1x1 conv as a channel-contraction matmul (BN2 scale pre-folded into w1) ----
    y1 = jnp.dot(w1_ref[...], h1, preferred_element_type=jnp.float32)    # (INTER, HW)

    # ---- BN2 bias + ReLU; stays f32 so the edge masking below is f32 ----
    h2 = jnp.maximum(y1 + b2_ref[...], 0.0)                              # (INTER, HW)

    # ---- 3x3 conv (padding=1) via im2col in the flat (channel, H*W) layout ----
    # Pad the flattened spatial axis once with W+1 zeros per side: every tap is a static
    # lane-offset window; row (dy) over/under-runs read the zero pad automatically and
    # only the column (dx) wrap-around needs the precomputed masks.
    pad = W + 1
    zpad = jnp.zeros((INTER, pad), jnp.float32)
    h2p = jnp.concatenate([zpad, h2, zpad], axis=1)                      # (INTER, HW+2W+2)

    for t in range(9):
        dy, dx = divmod(t, 3)
        off = (dy - 1) * W + (dx - 1)                                    # flat spatial offset
        slab = h2p[:, pad + off: pad + off + HW]                         # (INTER, HW) f32
        if dx != 1:                                                      # dx=0 -> left, dx=2 -> right
            slab = slab * cmask_ref[pl.ds(dx // 2, 1), :]
        patches_ref[pl.ds(t * INTER, INTER), :] = slab.astype(jnp.bfloat16)

    # ---- single MXU matmul over the stacked taps (K = 9*INTER) ----
    y2 = jnp.dot(w2_ref[...], patches_ref[...],
                 preferred_element_type=jnp.float32)                     # (GROWTH, HW)
    o_ref[0] = y2.astype(o_ref.dtype)


def bottleneck_forward(x_nchw, params):
    """x_nchw: (B, C, H, W) float32. Returns (B, C + growth, H, W) NCHW, like PyTorch."""
    B, C, H, W = x_nchw.shape
    w1 = params["w1"]            # (INTER, C)            PyTorch Conv2d 1x1 weight (OI)
    w2 = params["w2"]            # (GROWTH, INTER, 3, 3) PyTorch Conv2d OIHW
    INTER, GROWTH = w1.shape[0], w2.shape[0]
    HW = H * W
    eps = 1e-5

    # Alignment requirements for the in-place channel write (sublane quantum = 8; the
    # GROWTH-sized output block must land exactly at channel offset C).
    assert C % 8 == 0 and GROWTH % 8 == 0, "channel counts must be multiples of 8"
    assert C % GROWTH == 0, "C must be a multiple of GROWTH for the in-place concat write"

    # Fold BN params into scale/bias (inference semantics).
    s1 = params["bn1_gamma"] * jax.lax.rsqrt(params["bn1_var"] + eps)
    b1 = params["bn1_beta"] - params["bn1_mean"] * s1
    s2 = params["bn2_gamma"] * jax.lax.rsqrt(params["bn2_var"] + eps)
    b2 = params["bn2_beta"] - params["bn2_mean"] * s2

    # Fold BN2 scale into conv1's weight: s2 * (w1 @ h) == (s2[:, None] * w1) @ h.
    w1_eff = (s2[:, None] * w1).astype(jnp.bfloat16)                      # (INTER, C)
    # 3x3 weight flattened to (GROWTH, 9*INTER), tap-major / channel-minor to match the
    # im2col patch layout built in the kernel.
    w2_flat = jnp.transpose(w2, (0, 2, 3, 1)).reshape(GROWTH, 9 * INTER).astype(jnp.bfloat16)

    s1_c = s1.reshape(C, 1).astype(jnp.float32)
    b1_c = b1.reshape(C, 1).astype(jnp.float32)
    b2_c = b2.reshape(INTER, 1).astype(jnp.float32)

    # Precomputed column edge masks: row 0 = "may read column w-1", row 1 = "may read w+1".
    w_idx = jnp.arange(HW, dtype=jnp.int32) % W
    cmask = jnp.stack([w_idx >= 1, w_idx <= W - 2]).astype(jnp.float32)   # (2, HW)

    # Wide DenseNet buffer with x in channels [0, C); the kernel writes the GROWTH new
    # channels in place via input_output_aliases, so x never moves through a concat again.
    # (In a full DenseNet block the previous layer would produce this buffer directly.)
    x_flat = x_nchw.reshape(B, C, HW).astype(jnp.float32)
    dense_buf = jnp.concatenate(
        [x_flat, jnp.zeros((B, GROWTH, HW), jnp.float32)], axis=1)        # (B, C+GROWTH, HW)

    kernel = functools.partial(_bottleneck_kernel, H=H, W=W, INTER=INTER)

    flops = 2 * B * HW * (C * INTER + 9 * INTER * GROWTH)
    bytes_accessed = (4 * (B * C * HW + B * GROWTH * HW + 2 * C + INTER + 2 * HW)
                      + 2 * (w1_eff.size + w2_flat.size))

    out_flat = pl.pallas_call(
        kernel,
        out_shape=jax.ShapeDtypeStruct((B, C + GROWTH, HW), jnp.float32),
        grid_spec=pltpu.PrefetchScalarGridSpec(
            num_scalar_prefetch=0,
            grid=(B,),   # parallel axis; keep >= 2 (and even) so both v7x TCs get work
            in_specs=[
                pl.BlockSpec((1, C, HW), lambda b: (b, 0, 0)),        # x channels of dense_buf
                pl.BlockSpec((C, 1), lambda b: (0, 0)),
                pl.BlockSpec((C, 1), lambda b: (0, 0)),
                pl.BlockSpec((INTER, C), lambda b: (0, 0)),
                pl.BlockSpec((INTER, 1), lambda b: (0, 0)),
                pl.BlockSpec((GROWTH, 9 * INTER), lambda b: (0, 0)),
                pl.BlockSpec((2, HW), lambda b: (0, 0)),
            ],
            # Write only the GROWTH new channels, at channel offset C, of the aliased buffer.
            out_specs=pl.BlockSpec((1, GROWTH, HW), lambda b: (b, C // GROWTH, 0)),
            scratch_shapes=[pltpu.VMEM((9 * INTER, HW), jnp.bfloat16)],
        ),
        input_output_aliases={0: 0},            # dense_buf is updated in place
        compiler_params=pltpu.CompilerParams(dimension_semantics=("parallel",)),
        cost_estimate=pl.CostEstimate(flops=flops, transcendentals=0,
                                      bytes_accessed=bytes_accessed),
    )(dense_buf, s1_c, b1_c, w1_eff, b2_c, w2_flat, cmask)

    return out_flat.reshape(B, C + GROWTH, H, W)


def _reference_forward(x_nchw, params):
    """Plain-JAX f32 reference with identical (inference) semantics."""
    eps = 1e-5
    s1 = params["bn1_gamma"] / jnp.sqrt(params["bn1_var"] + eps)
    b1 = params["bn1_beta"] - params["bn1_mean"] * s1
    s2 = params["bn2_gamma"] / jnp.sqrt(params["bn2_var"] + eps)
    b2 = params["bn2_beta"] - params["bn2_mean"] * s2

    h1 = jnp.maximum(x_nchw * s1[None, :, None, None] + b1[None, :, None, None], 0.0)
    y1 = jax.lax.conv_general_dilated(
        h1, params["w1"][:, :, None, None], window_strides=(1, 1), padding="VALID",
        dimension_numbers=("NCHW", "OIHW", "NCHW"))
    h2 = jnp.maximum(y1 * s2[None, :, None, None] + b2[None, :, None, None], 0.0)
    y2 = jax.lax.conv_general_dilated(
        h2, params["w2"], window_strides=(1, 1), padding=((1, 1), (1, 1)),
        dimension_numbers=("NCHW", "OIHW", "NCHW"))
    return jnp.concatenate([x_nchw, y2], axis=1)


def make_params(n_channels, growth_rate, key):
    inter = 4 * growth_rate
    k = jax.random.split(key, 10)
    return {
        "bn1_gamma": 1.0 + 0.1 * jax.random.normal(k[0], (n_channels,), jnp.float32),
        "bn1_beta": 0.1 * jax.random.normal(k[1], (n_channels,), jnp.float32),
        "bn1_mean": 0.05 * jax.random.normal(k[2], (n_channels,), jnp.float32),
        "bn1_var": jnp.abs(1.0 + 0.1 * jax.random.normal(k[3], (n_channels,), jnp.float32)),
        "w1": 0.1 * jax.random.normal(k[4], (inter, n_channels), jnp.float32),
        "bn2_gamma": 1.0 + 0.1 * jax.random.normal(k[5], (inter,), jnp.float32),
        "bn2_beta": 0.1 * jax.random.normal(k[6], (inter,), jnp.float32),
        "bn2_mean": 0.05 * jax.random.normal(k[7], (inter,), jnp.float32),
        "bn2_var": jnp.abs(1.0 + 0.1 * jax.random.normal(k[8], (inter,), jnp.float32)),
        "w2": 0.1 * jax.random.normal(k[9], (growth_rate, inter, 3, 3), jnp.float32),
    }


if __name__ == "__main__":
    key = jax.random.PRNGKey(0)
    fwd = jax.jit(bottleneck_forward)

    configs = [
        # (B, C, H, W, growth): small demo + a closer-to-real size that re-validates the
        # im2col/edge-mask logic and the in-place channel write at C % GROWTH == 0, C > GROWTH.
        (2, 8, 16, 16, 8),
        (2, 64, 32, 32, 16),
    ]
    for (B, C, H, W, growth_rate) in configs:
        key, k_x, k_p = jax.random.split(key, 3)
        x = jax.random.normal(k_x, (B, C, H, W), jnp.float32)
        params = make_params(C, growth_rate, k_p)

        out = jax.block_until_ready(fwd(x, params))
        ref = _reference_forward(x, params)

        assert out.shape == (B, C + growth_rate, H, W), out.shape
        # bf16 MXU operands with f32 accumulation: expect ~1e-2-level differences vs f32 ref.
        assert jnp.allclose(out, ref, atol=5e-2, rtol=5e-2), (
            f"mismatch vs reference at config {(B, C, H, W, growth_rate)}")
        # Identity channels are carried in place via input_output_aliases -> bit-exact.
        assert jnp.array_equal(out[:, :C], x), "identity branch not preserved"

    print("KERNEL_OK")
</pallas_src>

<mosaic_0001>
module attributes {stable_mosaic.version = 11 : i64} {
  func.func @_bottleneck_kernel(%arg0: i32, %arg1: memref<1x8x256xf32, #tpu.memory_space<vmem>>, %arg2: memref<8x1xf32, #tpu.memory_space<vmem>>, %arg3: memref<8x1xf32, #tpu.memory_space<vmem>>, %arg4: memref<32x8xbf16, #tpu.memory_space<vmem>>, %arg5: memref<32x1xf32, #tpu.memory_space<vmem>>, %arg6: memref<8x288xbf16, #tpu.memory_space<vmem>>, %arg7: memref<2x256xf32, #tpu.memory_space<vmem>>, %arg8: memref<1x8x256xf32, #tpu.memory_space<vmem>>, %arg9: memref<288x256xbf16, #tpu.memory_space<vmem>>) attributes {dimension_semantics = [#tpu.dimension_semantics<parallel>], iteration_bounds = array<i64: 2>, scalar_prefetch = 0 : i64, scratch_operands = 1 : i64, tpu.core_type = #tpu.core_type<tc>, window_params = [{transform_indices = @transform_0, window_bounds = array<i64: 1, 8, 256>}, {pipeline_mode = #tpu.pipeline_mode<synchronous>, transform_indices = @transform_1, window_bounds = array<i64: 8, 1>}, {pipeline_mode = #tpu.pipeline_mode<synchronous>, transform_indices = @transform_2, window_bounds = array<i64: 8, 1>}, {pipeline_mode = #tpu.pipeline_mode<synchronous>, transform_indices = @transform_3, window_bounds = array<i64: 32, 8>}, {pipeline_mode = #tpu.pipeline_mode<synchronous>, transform_indices = @transform_4, window_bounds = array<i64: 32, 1>}, {pipeline_mode = #tpu.pipeline_mode<synchronous>, transform_indices = @transform_5, window_bounds = array<i64: 8, 288>}, {pipeline_mode = #tpu.pipeline_mode<synchronous>, transform_indices = @transform_6, window_bounds = array<i64: 2, 256>}, {transform_indices = @transform_7, window_bounds = array<i64: 1, 8, 256>}]} {
    %c0 = arith.constant 0 : index
    %c0_0 = arith.constant 0 : index
    %c0_1 = arith.constant 0 : index
    %0 = vector.load %arg1[%c0, %c0_0, %c0_1] : memref<1x8x256xf32, #tpu.memory_space<vmem>>, vector<1x8x256xf32>
    %1 = vector.shape_cast %0 : vector<1x8x256xf32> to vector<8x256xf32>
    %c0_2 = arith.constant 0 : index
    %c0_3 = arith.constant 0 : index
    %2 = vector.load %arg2[%c0_2, %c0_3] : memref<8x1xf32, #tpu.memory_space<vmem>>, vector<8x1xf32>
    %3 = vector.broadcast %2 : vector<8x1xf32> to vector<8x256xf32>
    %4 = arith.mulf %1, %3 : vector<8x256xf32>
    %c0_4 = arith.constant 0 : index
    %c0_5 = arith.constant 0 : index
    %5 = vector.load %arg3[%c0_4, %c0_5] : memref<8x1xf32, #tpu.memory_space<vmem>>, vector<8x1xf32>
    %6 = vector.broadcast %5 : vector<8x1xf32> to vector<8x256xf32>
    %7 = arith.addf %4, %6 : vector<8x256xf32>
    %cst = arith.constant 0.000000e+00 : f32
    %8 = vector.broadcast %cst : f32 to vector<8x256xf32>
    %9 = arith.maximumf %7, %8 : vector<8x256xf32>
    %10 = arith.truncf %9 : vector<8x256xf32> to vector<8x256xbf16>
    %c0_6 = arith.constant 0 : index
    %c0_7 = arith.constant 0 : index
    %11 = vector.load %arg4[%c0_6, %c0_7] : memref<32x8xbf16, #tpu.memory_space<vmem>>, vector<32x8xbf16>
    %cst_8 = arith.constant dense<0.000000e+00> : vector<32x256xf32>
    %12 = tpu.matmul %11, %10, %cst_8 {dimension_numbers = #tpu.dot_dimension_numbers<[1], [0], [0], [1], [0, 0, 1, 1], [], []>} : vector<32x8xbf16>, vector<8x256xbf16>, vector<32x256xf32> -> vector<32x256xf32>
    %c0_9 = arith.constant 0 : index
    %c0_10 = arith.constant 0 : index
    %13 = vector.load %arg5[%c0_9, %c0_10] : memref<32x1xf32, #tpu.memory_space<vmem>>, vector<32x1xf32>
    %14 = vector.broadcast %13 : vector<32x1xf32> to vector<32x256xf32>
    %15 = arith.addf %12, %14 : vector<32x256xf32>
    %cst_11 = arith.constant 0.000000e+00 : f32
    %16 = vector.broadcast %cst_11 : f32 to vector<32x256xf32>
    %17 = arith.maximumf %15, %16 : vector<32x256xf32>
    %cst_12 = arith.constant 0.000000e+00 : f32
    %18 = vector.broadcast %cst_12 : f32 to vector<32x17xf32>
    %19 = tpu.concatenate %18, %17, %18 in 1 : vector<32x17xf32>, vector<32x256xf32>, vector<32x17xf32> -> vector<32x290xf32>
    %20 = vector.extract_strided_slice %19 {offsets = [0, 0], sizes = [32, 256], strides = [1, 1]} : vector<32x290xf32> to vector<32x256xf32>
    %c0_13 = arith.constant 0 : index
    %c0_14 = arith.constant 0 : index
    %21 = vector.load %arg7[%c0_13, %c0_14] : memref<2x256xf32, #tpu.memory_space<vmem>>, vector<1x256xf32>
    %22 = vector.broadcast %21 : vector<1x256xf32> to vector<32x256xf32>
    %23 = arith.mulf %20, %22 : vector<32x256xf32>
    %24 = arith.truncf %23 : vector<32x256xf32> to vector<32x256xbf16>
    %c0_15 = arith.constant 0 : index
    %c0_16 = arith.constant 0 : index
    %25 = vector.load %arg9[%c0_15, %c0_16] : memref<288x256xbf16, #tpu.memory_space<vmem>>, vector<32x256xbf16>
    tpu.vector_store %arg9[%c0_15, %c0_16], %24 {strides = array<i32>} : memref<288x256xbf16, #tpu.memory_space<vmem>>, vector<32x256xbf16>,
    %26 = vector.extract_strided_slice %19 {offsets = [0, 1], sizes = [32, 256], strides = [1, 1]} : vector<32x290xf32> to vector<32x256xf32>
    %27 = arith.truncf %26 : vector<32x256xf32> to vector<32x256xbf16>
    %c32 = arith.constant 32 : index
    %c0_17 = arith.constant 0 : index
    %28 = vector.load %arg9[%c32, %c0_17] : memref<288x256xbf16, #tpu.memory_space<vmem>>, vector<32x256xbf16>
    tpu.vector_store %arg9[%c32, %c0_17], %27 {strides = array<i32>} : memref<288x256xbf16, #tpu.memory_space<vmem>>, vector<32x256xbf16>,
    %29 = vector.extract_strided_slice %19 {offsets = [0, 2], sizes = [32, 256], strides = [1, 1]} : vector<32x290xf32> to vector<32x256xf32>
    %c1 = arith.constant 1 : index
    %c0_18 = arith.constant 0 : index
    %30 = vector.load %arg7[%c1, %c0_18] : memref<2x256xf32, #tpu.memory_space<vmem>>, vector<1x256xf32>
    %31 = vector.broadcast %30 : vector<1x256xf32> to vector<32x256xf32>
    %32 = arith.mulf %29, %31 : vector<32x256xf32>
    %33 = arith.truncf %32 : vector<32x256xf32> to vector<32x256xbf16>
    %c64 = arith.constant 64 : index
    %c0_19 = arith.constant 0 : index
    %34 = vector.load %arg9[%c64, %c0_19] : memref<288x256xbf16, #tpu.memory_space<vmem>>, vector<32x256xbf16>
    tpu.vector_store %arg9[%c64, %c0_19], %33 {strides = array<i32>} : memref<288x256xbf16, #tpu.memory_space<vmem>>, vector<32x256xbf16>,
    %35 = vector.extract_strided_slice %19 {offsets = [0, 16], sizes = [32, 256], strides = [1, 1]} : vector<32x290xf32> to vector<32x256xf32>
    %c0_20 = arith.constant 0 : index
    %c0_21 = arith.constant 0 : index
    %36 = vector.load %arg7[%c0_20, %c0_21] : memref<2x256xf32, #tpu.memory_space<vmem>>, vector<1x256xf32>
    %37 = vector.broadcast %36 : vector<1x256xf32> to vector<32x256xf32>
    %38 = arith.mulf %35, %37 : vector<32x256xf32>
    %39 = arith.truncf %38 : vector<32x256xf32> to vector<32x256xbf16>
    %c96 = arith.constant 96 : index
    %c0_22 = arith.constant 0 : index
    %40 = vector.load %arg9[%c96, %c0_22] : memref<288x256xbf16, #tpu.memory_space<vmem>>, vector<32x256xbf16>
    tpu.vector_store %arg9[%c96, %c0_22], %39 {strides = array<i32>} : memref<288x256xbf16, #tpu.memory_space<vmem>>, vector<32x256xbf16>,
    %41 = vector.extract_strided_slice %19 {offsets = [0, 17], sizes = [32, 256], strides = [1, 1]} : vector<32x290xf32> to vector<32x256xf32>
    %42 = arith.truncf %41 : vector<32x256xf32> to vector<32x256xbf16>
    %c128 = arith.constant 128 : index
    %c0_23 = arith.constant 0 : index
    %43 = vector.load %arg9[%c128, %c0_23] : memref<288x256xbf16, #tpu.memory_space<vmem>>, vector<32x256xbf16>
    tpu.vector_store %arg9[%c128, %c0_23], %42 {strides = array<i32>} : memref<288x256xbf16, #tpu.memory_space<vmem>>, vector<32x256xbf16>,
    %44 = vector.extract_strided_slice %19 {offsets = [0, 18], sizes = [32, 256], strides = [1, 1]} : vector<32x290xf32> to vector<32x256xf32>
    %c1_24 = arith.constant 1 : index
    %c0_25 = arith.constant 0 : index
    %45 = vector.load %arg7[%c1_24, %c0_25] : memref<2x256xf32, #tpu.memory_space<vmem>>, vector<1x256xf32>
    %46 = vector.broadcast %45 : vector<1x256xf32> to vector<32x256xf32>
    %47 = arith.mulf %44, %46 : vector<32x256xf32>
    %48 = arith.truncf %47 : vector<32x256xf32> to vector<32x256xbf16>
    %c160 = arith.constant 160 : index
    %c0_26 = arith.constant 0 : index
    %49 = vector.load %arg9[%c160, %c0_26] : memref<288x256xbf16, #tpu.memory_space<vmem>>, vector<32x256xbf16>
    tpu.vector_store %arg9[%c160, %c0_26], %48 {strides = array<i32>} : memref<288x256xbf16, #tpu.memory_space<vmem>>, vector<32x256xbf16>,
    %50 = vector.extract_strided_slice %19 {offsets = [0, 32], sizes = [32, 256], strides = [1, 1]} : vector<32x290xf32> to vector<32x256xf32>
    %c0_27 = arith.constant 0 : index
    %c0_28 = arith.constant 0 : index
    %51 = vector.load %arg7[%c0_27, %c0_28] : memref<2x256xf32, #tpu.memory_space<vmem>>, vector<1x256xf32>
    %52 = vector.broadcast %51 : vector<1x256xf32> to vector<32x256xf32>
    %53 = arith.mulf %50, %52 : vector<32x256xf32>
    %54 = arith.truncf %53 : vector<32x256xf32> to vector<32x256xbf16>
    %c192 = arith.constant 192 : index
    %c0_29 = arith.constant 0 : index
    %55 = vector.load %arg9[%c192, %c0_29] : memref<288x256xbf16, #tpu.memory_space<vmem>>, vector<32x256xbf16>
    tpu.vector_store %arg9[%c192, %c0_29], %54 {strides = array<i32>} : memref<288x256xbf16, #tpu.memory_space<vmem>>, vector<32x256xbf16>,
    %56 = vector.extract_strided_slice %19 {offsets = [0, 33], sizes = [32, 256], strides = [1, 1]} : vector<32x290xf32> to vector<32x256xf32>
    %57 = arith.truncf %56 : vector<32x256xf32> to vector<32x256xbf16>
    %c224 = arith.constant 224 : index
    %c0_30 = arith.constant 0 : index
    %58 = vector.load %arg9[%c224, %c0_30] : memref<288x256xbf16, #tpu.memory_space<vmem>>, vector<32x256xbf16>
    tpu.vector_store %arg9[%c224, %c0_30], %57 {strides = array<i32>} : memref<288x256xbf16, #tpu.memory_space<vmem>>, vector<32x256xbf16>,
    %59 = vector.extract_strided_slice %19 {offsets = [0, 34], sizes = [32, 256], strides = [1, 1]} : vector<32x290xf32> to vector<32x256xf32>
    %c1_31 = arith.constant 1 : index
    %c0_32 = arith.constant 0 : index
    %60 = vector.load %arg7[%c1_31, %c0_32] : memref<2x256xf32, #tpu.memory_space<vmem>>, vector<1x256xf32>
    %61 = vector.broadcast %60 : vector<1x256xf32> to vector<32x256xf32>
    %62 = arith.mulf %59, %61 : vector<32x256xf32>
    %63 = arith.truncf %62 : vector<32x256xf32> to vector<32x256xbf16>
    %c256 = arith.constant 256 : index
    %c0_33 = arith.constant 0 : index
    %64 = vector.load %arg9[%c256, %c0_33] : memref<288x256xbf16, #tpu.memory_space<vmem>>, vector<32x256xbf16>
    tpu.vector_store %arg9[%c256, %c0_33], %63 {strides = array<i32>} : memref<288x256xbf16, #tpu.memory_space<vmem>>, vector<32x256xbf16>,
    %c0_34 = arith.constant 0 : index
    %c0_35 = arith.constant 0 : index
    %65 = vector.load %arg6[%c0_34, %c0_35] : memref<8x288xbf16, #tpu.memory_space<vmem>>, vector<8x288xbf16>
    %c0_36 = arith.constant 0 : index
    %c0_37 = arith.constant 0 : index
    %66 = vector.load %arg9[%c0_36, %c0_37] : memref<288x256xbf16, #tpu.memory_space<vmem>>, vector<288x256xbf16>
    %cst_38 = arith.constant dense<0.000000e+00> : vector<8x256xf32>
    %67 = tpu.matmul %65, %66, %cst_38 {dimension_numbers = #tpu.dot_dimension_numbers<[1], [0], [0], [1], [0, 0, 1, 1], [], []>} : vector<8x288xbf16>, vector<288x256xbf16>, vector<8x256xf32> -> vector<8x256xf32>
    %c0_39 = arith.constant 0 : index
    %c0_40 = arith.constant 0 : index
    %c0_41 = arith.constant 0 : index
    %68 = vector.load %arg8[%c0_39, %c0_40, %c0_41] : memref<1x8x256xf32, #tpu.memory_space<vmem>>, vector<1x8x256xf32>
    %69 = vector.shape_cast %68 : vector<1x8x256xf32> to vector<8x256xf32>
    %70 = vector.shape_cast %67 : vector<8x256xf32> to vector<1x8x256xf32>
    tpu.vector_store %arg8[%c0_39, %c0_40, %c0_41], %70 {strides = array<i32>} : memref<1x8x256xf32, #tpu.memory_space<vmem>>, vector<1x8x256xf32>,
    return
  }
  func.func @transform_0(%arg0: i32) -> (i32, i32, i32) {
    %c0_i32 = arith.constant 0 : i32
    %c0_i32_0 = arith.constant 0 : i32
    %c0_i32_1 = arith.constant 0 : i32
    return %arg0, %c0_i32, %c0_i32_0 : i32, i32, i32
  }
  func.func @transform_1(%arg0: i32) -> (i32, i32) {
    %c0_i32 = arith.constant 0 : i32
    %c0_i32_0 = arith.constant 0 : i32
    %c0_i32_1 = arith.constant 0 : i32
    return %c0_i32, %c0_i32_0 : i32, i32
  }
  func.func @transform_2(%arg0: i32) -> (i32, i32) {
    %c0_i32 = arith.constant 0 : i32
    %c0_i32_0 = arith.constant 0 : i32
    %c0_i32_1 = arith.constant 0 : i32
    return %c0_i32, %c0_i32_0 : i32, i32
  }
  func.func @transform_3(%arg0: i32) -> (i32, i32) {
    %c0_i32 = arith.constant 0 : i32
    %c0_i32_0 = arith.constant 0 : i32
    %c0_i32_1 = arith.constant 0 : i32
    return %c0_i32, %c0_i32_0 : i32, i32
  }
  func.func @transform_4(%arg0: i32) -> (i32, i32) {
    %c0_i32 = arith.constant 0 : i32
    %c0_i32_0 = arith.constant 0 : i32
    %c0_i32_1 = arith.constant 0 : i32
    return %c0_i32, %c0_i32_0 : i32, i32
  }
  func.func @transform_5(%arg0: i32) -> (i32, i32) {
    %c0_i32 = arith.constant 0 : i32
    %c0_i32_0 = arith.constant 0 : i32
    %c0_i32_1 = arith.constant 0 : i32
    return %c0_i32, %c0_i32_0 : i32, i32
  }
  func.func @transform_6(%arg0: i32) -> (i32, i32) {
    %c0_i32 = arith.constant 0 : i32
    %c0_i32_0 = arith.constant 0 : i32
    %c0_i32_1 = arith.constant 0 : i32
    return %c0_i32, %c0_i32_0 : i32, i32
  }
  func.func @transform_7(%arg0: i32) -> (i32, i32, i32) {
    %c1_i32 = arith.constant 1 : i32
    %c0_i32 = arith.constant 0 : i32
    %c0_i32_0 = arith.constant 0 : i32
    return %arg0, %c1_i32, %c0_i32 : i32, i32, i32
  }
}

</mosaic_0001>

<bundles_post_ra>
// kernel: bottleneck_forward.1
= control target key start
LH: loop header
LB: loop body
LE: loop exit
PB: predicated region body
PF: predicated region fallthrough
CT: control target
= control target key end

     0   :  { %s1244_s24 = smov 0   ;;  %s1703_s0 = inlined_call_operand.vmem [shape: f32[2,16,256], index: 0, kind: input, shape index: {}, may-alias: {0,7}]   ;;  %s1704_s1 = inlined_call_operand.vmem [shape: f32[8,1], index: 1, kind: input, shape index: {}]   ;;  %s1705_s2 = inlined_call_operand.vmem [shape: f32[8,1], index: 2, kind: input, shape index: {}]   ;;  %s1706_s3 = inlined_call_operand.vmem [shape: bf16[32,8], index: 3, kind: input, shape index: {}]   ;;  %s1707_s4 = inlined_call_operand.vmem [shape: f32[32,1], index: 4, kind: input, shape index: {}]   ;;  %s1708_s5 = inlined_call_operand.vmem [shape: bf16[8,288], index: 5, kind: input, shape index: {}]   ;;  %s1709_s6 = inlined_call_operand.vmem [shape: f32[2,256], index: 6, kind: input, shape index: {}]   ;;  %s1710_s7 = inlined_call_operand.vmem [shape: f32[2,16,256], index: 7, kind: output, shape index: {}, may-alias: {0,7}]  }
   0x1 LB: > { %s1122_s25 = sadd.s32 4294967295, %s1187_s24   ;;  %p1126_p0 = scmp.ge.s32.totalorder %s1187_s24, 1  ;;  %s1187_s24 = sphi %s1244_s24, %s17_s24  }
   0x2   : > { %p237_p1 = scmp.lt.s32.totalorder %s1187_s24, 3 }
   0x4   : > { %p238_p2 = pnand %p1126_p0, %p237_p1 }
   0x5   : > { %v284_v0 = vld [vmem:[%s1704_s1] sm:$0xff] (!%p238_p2)  ;;  %v1189_v1 = vmov (!%p238_p2), 0   ;;  %v310_v3 = vld [vmem:[%s1707_s4 + $0x10] sm:$0xff] (!%p238_p2)  ;;  %v309_v5 = vld [vmem:[%s1707_s4 + $0x8] sm:$0xff] (!%p238_p2)  ;;  %p270_p3 = scmp.lt.s32.totalorder (!%p238_p2), %s1122_s25, 1  ;;  %vm349_vm0 = vcmask (!%p238_p2), 1043456   ;;  %v468_v22 = vlaneseq (!%p238_p2) }
   0x6   : > { %241 = sbr.rel (%p238_p2) target bundleno = 916 (0x394), region = 48  ;;  %1174 = vset.pattern.permute.xlu0 (!%p238_p2), %v1189_v1  ;;  %388 = vmatprep.mubr.bf16.mxu0 (!%p238_p2), %v1189_v1  ;;  %v292_v2 = vld [vmem:[%s1705_s2] sm:$0xff] (!%p238_p2)  ;;  %v311_v6 = vld [vmem:[%s1707_s4 + $0x18] sm:$0xff] (!%p238_p2)  ;;  %vm342_vm1 = vcmask (!%p238_p2), 64512   ;;  %v1177_v21 = vld [vmem:[%s1706_s3 + $0x8] sm:$0xff] (!%p238_p2)   ;;  %s1190_s27 = smov (!%p238_p2), 2  }
   0x7   : > { %287 = vperm.xlu0 (!%p238_p2), %1174, %v284_v0   ;;  %1175 = vset.pattern.permute.xlu1 (!%p238_p2), %v1189_v1  ;;  %v308_v4 = vld [vmem:[%s1707_s4] sm:$0xff] (!%p238_p2)  ;;  %v469_v23 = vshrl.u32 (!%p238_p2), %v468_v22, 7  ;;  %s1191_s28 = smov (!%p238_p2), 17   ;;  %s1192_s10 = smov (!%p238_p2), 16   ;;  %vm441_vm2 = vcmask (!%p238_p2), 138240   ;;  %vm546_vm3 = vcmask (!%p238_p2), 15360  }
   0x8   : > { %314 = vperm.xlu1 (!%p238_p2), %1175, %v308_v4   ;;  %v1176_v20 = vld [vmem:[%s1706_s3] sm:$0xff] (!%p238_p2)   ;;  %s1193_s13 = smov (!%p238_p2), 18   ;;  %s1194_s17 = smov (!%p238_p2), 32   ;;  %vm614_vm4 = vcmask (!%p238_p2), 130048   ;;  %vm775_vm5 = vcmask (!%p238_p2), 261120   ;;  %vm868_vm6 = vcmask (!%p238_p2), 277504  }
   0x9   : > { %v1284_v24 = vsub.s32 (!%p238_p2), 0, %v469_v23  ;;  %v1136_v25 = vld [vmem:[%s1709_s6 + $0x1] ss:$2 sm:$0x3] (!%p238_p2)  ;;  %v1289_v26 = vsub.s32 (!%p238_p2), 1, %v469_v23  ;;  %s1196_s21 = smov (!%p238_p2), 127  }
   0xa   : > { %v600_v55 = vld [vmem:[%s1709_s6] ss:$2 sm:$0x3] (!%p238_p2)  ;;  %v1137_v60 = vld [vmem:[%s1709_s6 + $0x1] ss:$2 sm:$0x3] (!%p238_p2) }
   0xb   : > { %295 = vperm.xlu0 (!%p238_p2), %1174, %v292_v2   ;;  %v537_v27 = vrot.slane (!%p238_p2), %v1136_v25, %v1284_v24  ;;  %v541_v28 = vrot.slane (!%p238_p2), %v1136_v25, %v1289_v26  ;;  %v605_v58 = vrot.slane (!%p238_p2), %v600_v55, %v1284_v24  ;;  %v609_v59 = vrot.slane (!%p238_p2), %v600_v55, %v1289_v26  ;;  %v761_v63 = vld [vmem:[%s1709_s6] ss:$2 sm:$0x3] (!%p238_p2)  ;;  %v1138_v2 = vld [vmem:[%s1709_s6 + $0x1] ss:$2 sm:$0x3] (!%p238_p2) }
   0xc   : > { %319 = vperm.xlu1 (!%p238_p2), %1175, %v309_v5   ;;  %v698_v61 = vrot.slane (!%p238_p2), %v1137_v60, %v1284_v24  ;;  %v702_v62 = vrot.slane (!%p238_p2), %v1137_v60, %v1289_v26  ;;  %v766_v0 = vrot.slane (!%p238_p2), %v761_v63, %v1284_v24  ;;  %v863_v4 = vrot.slane (!%p238_p2), %v1138_v2, %v1289_v26  ;;  %s1197_s22 = smov (!%p238_p2), 111   ;;  %s1198_s23 = smov (!%p238_p2), 126  }
   0xd   : > { %s1712_s25 = smov (!%p270_p3, %s1122_s25), 1  ;;  %s1199_s26 = smov 112   ;;  %vm707_vm7 = vcmask 146432   ;;  %vm518_vm8 = vcmask 1039360   ;;  %vm587_vm9 = vcmask 1031168   ;;  %vm655_vm10 = vcmask 916480  }
   0xe   : > { %s1147_s15 = sshll.u32 %s1712_s25, 5  ;;  %s1202_s29 = smov 95   ;;  %vm680_vm11 = vcmask 908288   ;;  %vm748_vm12 = vcmask 900096   ;;  %vm909_vm13 = vcmask 769024   ;;  %vm816_vm14 = vcmask 785408  }
   0xf   : > { %324 = vperm.xlu0 %1174, %v310_v3   ;;  %s274_s18 = scalar_lea.vmem %s1703_s0, %s1147_s15  ;;  %v859_v3 = vrot.slane %v1138_v2, %v1284_v24  ;;  %s1203_s30 = smov 94   ;;  %vm841_vm15 = vcmask 777216  }
  0x10   : > { %329 = vperm.xlu1 %1175, %v311_v6   ;;  %v282_v8 = vld [vmem:[%s274_s18] sm:$0xff]  ;;  %v283_v9 = vld [vmem:[%s274_s18 + $0x8] sm:$0xff]  ;;  %s1195_s18 = smov 34   ;;  %s1092_s14 = scalar_lea.vmem %s1710_s7, %s1147_s15 }
  0x13   : > { %542 = vrot.lane.b32.xlu0 %v537_v27, %s1190_s27 }
  0x14   : > { %544 = vrot.lane.b32.xlu1 %v541_v28, %s1190_s27  ;;  %s1200_s27 = smov 110  }
  0x86   : > { %v288_v7 = vpop.permute.xlu0 %287 }
  0x87   : > { %v290_v10 = vmul.f32 %v288_v7, %v282_v8  ;;  %v291_v11 = vmul.f32 %v288_v7, %v283_v9  ;;  %v315_v29 = vpop.permute.xlu1 %314  ;;  %v466_v8 = vld [vmem:[%s1709_s6] ss:$2 sm:$0x3] }
  0x8a   : > { %v296_v12 = vpop.permute.xlu0 %295 }
  0x8b   : > { %v298_v13 = vadd.f32 %v296_v12, %v290_v10  ;;  %v299_v14 = vadd.f32 %v296_v12, %v291_v11  ;;  %v320_v33 = vpop.permute.xlu1 %319  ;;  %v475_v10 = vrot.slane %v466_v8, %v1289_v26 }
  0x8d   : > { %v300_v15 = vmax.f32 %v298_v13, 0.0  ;;  %v301_v16 = vmax.f32 %v299_v14, 0.0  ;;  %v471_v13 = vrot.slane %v466_v8, %v1284_v24 }
  0x8e   : > { %v325_v42 = vpop.permute.xlu0 %324 }
  0x8f   : > { %v303_v17 = vpack.c.bf16 %v301_v16, %v301_v16  ;;  %v302_v18 = vpack.c.bf16 %v300_v15, %v300_v15  ;;  %v330_v47 = vpop.permute.xlu1 %329 }
  0x91   : > { %1133 = vmatprep.subr.msk.bf16.mxu0 %vm349_vm0, %v303_v17  ;;  %v351_v19 = vsel %vm349_vm0, %v302_v18, 0 }
  0x92   : > { %357 = vmatpush1.bf16.msra.mxu0 %v351_v19  ;;  %v1313_v5 = vpop.permute.xlu0 %542 }
  0x93   : > { %v1315_v6 = vpop.permute.xlu1 %544 }
  0x94   : > { %v1432_v2 = vsel %vm546_vm3, %v1313_v5, %v1315_v6 }
  0x95   : > { %1134 = vmatmul.mubr.msk.bf16.vlgmr.msra.gmra.mrb[0].mxu0 %vm342_vm1, %v1176_v20 }
  0x96   : > { %398 = vmatprep.mubr.bf16.mxu0 %v1189_v1 }
  0x9d   : > { %1135 = vmatmul.mubr.msk.bf16.gmra.mrb[4].mxu0 %vm342_vm1, %v1177_v21 }
  0x9e   : > { %1046 = vmatprep.mubr.bf16.mxu0 %v1189_v1  ;;  %v770_v1 = vrot.slane %v761_v63, %v1289_v26 }
 0x168   : > { %v390_v30 = vpop.f32.mrb[0].mxu0 }
 0x169   : > { %v391_v31 = vadd.f32 %v390_v30, %v315_v29  ;;  %v392_v32 = vpop.f32.mrb[1].mxu0 }
 0x16a   : > { %v393_v34 = vadd.f32 %v392_v32, %v315_v29  ;;  %v394_v35 = vpop.f32.mrb[2].mxu0 }
 0x16b   : > { %v409_v36 = vmax.f32 %v391_v31, 0.0  ;;  %v395_v37 = vadd.f32 %v394_v35, %v320_v33  ;;  %v396_v38 = vpop.f32.mrb[3].mxu0 }
 0x16c   : > { %v410_v39 = vmax.f32 %v393_v34, 0.0  ;;  %v397_v40 = vadd.f32 %v396_v38, %v320_v33 }
 0x16d   : > { %425 = vrot.lane.b32.xlu0 %v409_v36, %s1191_s28  ;;  %v411_v41 = vmax.f32 %v395_v37, 0.0 }
 0x16e   : > { %427 = vrot.lane.b32.xlu1 %v410_v39, %s1191_s28  ;;  %v412_v43 = vmax.f32 %v397_v40, 0.0 }
 0x170   : > { %v400_v44 = vpop.f32.mrb[4].mxu0 }
 0x171   : > { %v401_v45 = vadd.f32 %v400_v44, %v325_v42  ;;  %v402_v46 = vpop.f32.mrb[5].mxu0  ;;  %429 = vrot.lane.b32.xlu0 %v411_v41, %s1191_s28 }
 0x172   : > { %v403_v48 = vadd.f32 %v402_v46, %v325_v42  ;;  %v404_v49 = vpop.f32.mrb[6].mxu0  ;;  %431 = vrot.lane.b32.xlu1 %v412_v43, %s1191_s28 }
 0x173   : > { %v413_v50 = vmax.f32 %v401_v45, 0.0  ;;  %v405_v51 = vadd.f32 %v404_v49, %v330_v47  ;;  %v406_v52 = vpop.f32.mrb[7].mxu0 }
 0x174   : > { %v414_v53 = vmax.f32 %v403_v48, 0.0  ;;  %v407_v54 = vadd.f32 %v406_v52, %v330_v47 }
 0x175   : > { %433 = vrot.lane.b32.xlu0 %v413_v50, %s1191_s28  ;;  %v415_v56 = vmax.f32 %v405_v51, 0.0 }
 0x176   : > { %435 = vrot.lane.b32.xlu1 %v414_v53, %s1191_s28  ;;  %v416_v57 = vmax.f32 %v407_v54, 0.0 }
 0x179   : > { %437 = vrot.lane.b32.xlu0 %v415_v56, %s1191_s28 }
 0x17a   : > { %439 = vrot.lane.b32.xlu1 %v416_v57, %s1191_s28  ;;  %s1201_s28 = smov 96  }
 0x17d   : > { %610 = vrot.lane.b32.xlu0 %v605_v58, %s1192_s10 }
 0x17e   : > { %612 = vrot.lane.b32.xlu1 %v609_v59, %s1192_s10 }
 0x181   : > { %703 = vrot.lane.b32.xlu0 %v698_v61, %s1193_s13 }
 0x182   : > { %705 = vrot.lane.b32.xlu1 %v702_v62, %s1193_s13 }
 0x185   : > { %771 = vrot.lane.b32.xlu0 %v766_v0, %s1194_s17 }
 0x186   : > { %773 = vrot.lane.b32.xlu1 %v770_v1, %s1194_s17 }
 0x189   : > { %864 = vrot.lane.b32.xlu0 %v859_v3, %s1195_s18 }
 0x18a   : > { %866 = vrot.lane.b32.xlu1 %v863_v4, %s1195_s18 }
 0x1df   : > { %v426_v7 = vpop.permute.xlu0 %425 }
 0x1e0   : > { %v428_v9 = vpop.permute.xlu1 %427  ;;  %v1326_v14 = vsel %vm441_vm2, 0.0, %v426_v7 }
 0x1e1   : > { %v1322_v11 = vsel %vm441_vm2, %v426_v7, %v428_v9  ;;  %v1329_v15 = vsel %vm441_vm2, %v428_v9, 0.0  ;;  %v478_v26 = vmul.f32 %v471_v13, %v1326_v14  ;;  %v551_v51 = vmul.f32 %v1313_v5, %v1326_v14 }
 0x1e2   : > { %v479_v23 = vmul.f32 %v475_v10, %v1322_v11  ;;  %v553_v36 = vmul.f32 %v1315_v6, %v1329_v15 }
 0x1e3   : > { %v430_v12 = vpop.permute.xlu0 %429 }
 0x1e4   : > { %v1332_v16 = vsel %vm441_vm2, 0.0, %v430_v12  ;;  %v432_v17 = vpop.permute.xlu1 %431 }
 0x1e5   : > { %v1335_v18 = vsel %vm441_vm2, %v430_v12, %v432_v17  ;;  %v1338_v19 = vsel %vm441_vm2, %v432_v17, 0.0  ;;  %v1342_v20 = vpack.c.bf16 %v1332_v16, %v1326_v14  ;;  %v480_v21 = vmul.f32 %v471_v13, %v1332_v16 }
 0x1e6   : > { %v1347_v22 = vpack.c.bf16 %v1338_v19, %v1329_v15  ;;  %v481_v24 = vmul.f32 %v475_v10, %v1335_v18  ;;  %v556_v30 = vmul.f32 %v1315_v6, %v1338_v19  ;;  %v1384_v38 = vpack.c.bf16 %v1335_v18, %v1322_v11 }
 0x1e7   : > { %506 = vrot.lane.b32.xlu0 %v1342_v20, %s1196_s21  ;;  %v434_v25 = vpop.permute.xlu0 %433  ;;  %v486_v29 = vpack.c.bf16 %v480_v21, %v478_v26  ;;  %v554_v47 = vmul.f32 %v1313_v5, %v1332_v16  ;;  %v555_v7 = vmul.f32 %v1432_v2, %v1335_v18  ;;  %v552_v12 = vmul.f32 %v1432_v2, %v1322_v11 }
 0x1e8   : > { %510 = vrot.lane.b32.xlu1 %v1347_v22, %s1196_s21  ;;  %v1356_v27 = vpop.permute.xlu1 %435  ;;  %v487_v28 = vpack.c.bf16 %v481_v24, %v479_v23  ;;  %v1367_v33 = vsel %vm441_vm2, 0.0, %v434_v25  ;;  %v565_v40 = vpack.c.bf16 %v556_v30, %v553_v36 }
 0x1e9   : > { %v1362_v31 = vsel %vm441_vm2, %v434_v25, %v1356_v27  ;;  %v482_v44 = vmul.f32 %v471_v13, %v1367_v33  ;;  %v563_v55 = vpack.c.bf16 %v554_v47, %v551_v51  ;;  %v564_v26 = vpack.c.bf16 %v555_v7, %v552_v12 }
 0x1ea   : > { %973 = vmatprep.subr.bf16.mxu1 %v487_v28  ;;  %v483_v41 = vmul.f32 %v475_v10, %v1362_v31 }
 0x1eb   : > { %668 = vrot.lane.b32.xlu0 %v1342_v20, %s1197_s22  ;;  %974 = vmatpush1.bf16.msra.mxu1 %v486_v29  ;;  %v438_v32 = vpop.permute.xlu0 %437 }
 0x1ec   : > { %v1370_v34 = vsel %vm441_vm2, 0.0, %v438_v32  ;;  %672 = vrot.lane.b32.xlu1 %v1347_v22, %s1197_s22  ;;  %v1374_v35 = vpop.permute.xlu1 %439 }
 0x1ed   : > { %v1380_v37 = vsel %vm441_vm2, %v438_v32, %v1374_v35  ;;  %v484_v39 = vmul.f32 %v471_v13, %v1370_v34  ;;  %v1437_v4 = vpack.c.bf16 %v1370_v34, %v1367_v33 }
 0x1ee   : > { %v485_v42 = vmul.f32 %v475_v10, %v1380_v37 }
 0x1ef   : > { %508 = vrot.lane.b32.xlu0 %v1384_v38, %s1196_s21  ;;  %v1391_v43 = vpop.permute.xlu0 %610  ;;  %v488_v48 = vpack.c.bf16 %v484_v39, %v482_v44 }
 0x1f0   : > { %579 = vrot.lane.b32.xlu1 %v565_v40, %s1198_s23  ;;  %v1395_v45 = vpop.permute.xlu1 %612  ;;  %v489_v46 = vpack.c.bf16 %v485_v42, %v483_v41  ;;  %v619_v58 = vmul.f32 %v1391_v43, %v1326_v14  ;;  %v622_v59 = vmul.f32 %v1391_v43, %v1332_v16  ;;  %v628_v7 = vmul.f32 %v1391_v43, %v1370_v34 }
 0x1f1   : > { %v621_v49 = vmul.f32 %v1395_v45, %v1329_v15  ;;  %v624_v50 = vmul.f32 %v1395_v45, %v1338_v19  ;;  %v1443_v8 = vsel %vm614_vm4, %v1391_v43, %v1395_v45 }
 0x1f2   : > { %975 = vmatprep.subr.bf16.mxu1 %v489_v46  ;;  %v631_v1 = vpack.c.bf16 %v622_v59, %v619_v58  ;;  %v620_v32 = vmul.f32 %v1443_v8, %v1322_v11  ;;  %v623_v36 = vmul.f32 %v1443_v8, %v1335_v18  ;;  %v560_v59 = vmul.f32 %v1313_v5, %v1370_v34 }
 0x1f3   : > { %670 = vrot.lane.b32.xlu0 %v1384_v38, %s1197_s22  ;;  %976 = vmatpush1.bf16.msra.mxu1 %v488_v48  ;;  %v1407_v52 = vpop.permute.xlu0 %703  ;;  %v633_v53 = vpack.c.bf16 %v624_v50, %v621_v49  ;;  %v1511_v49 = vpack.c.bf16 %v1380_v37, %v1362_v31 }
 0x1f4   : > { %v1409_v54 = vpop.permute.xlu1 %705  ;;  %v712_v63 = vmul.f32 %v1407_v52, %v1326_v14  ;;  %v715_v0 = vmul.f32 %v1407_v52, %v1332_v16  ;;  %v718_v12 = vmul.f32 %v1407_v52, %v1367_v33 }
 0x1f5   : > { %647 = vrot.lane.b32.xlu1 %v633_v53, %s1199_s26  ;;  %v714_v56 = vmul.f32 %v1409_v54, %v1329_v15  ;;  %v717_v57 = vmul.f32 %v1409_v54, %v1338_v19  ;;  %v1503_v47 = vsel %vm707_vm7, %v1407_v52, %v1409_v54 }
 0x1f6   : > { %v724_v10 = vpack.c.bf16 %v715_v0, %v712_v63  ;;  %v557_v63 = vmul.f32 %v1313_v5, %v1367_v33  ;;  %v1537_v0 = vsel %vm441_vm2, %v1374_v35, 0.0 }
 0x1f7   : > { %575 = vrot.lane.b32.xlu0 %v563_v55, %s1198_s23  ;;  %v1421_v60 = vpop.permute.xlu0 %771  ;;  %v726_v61 = vpack.c.bf16 %v717_v57, %v714_v56  ;;  %v632_v55 = vpack.c.bf16 %v623_v36, %v620_v32  ;;  %v713_v56 = vmul.f32 %v1503_v47, %v1322_v11  ;;  %v716_v57 = vmul.f32 %v1503_v47, %v1335_v18 }
 0x1f8   : > { %v1423_v62 = vpop.permute.xlu1 %773  ;;  %v561_v32 = vmul.f32 %v1432_v2, %v1380_v37 }
 0x1f9   : > { %740 = vrot.lane.b32.xlu1 %v726_v61, %s1200_s27  ;;  %v776_v13 = vsel %vm775_vm5, %v1421_v60, %v1423_v62  ;;  %v725_v61 = vpack.c.bf16 %v716_v57, %v713_v56 }
 0x1fa   : > { %v1485_v40 = vmul.f32 %v776_v13, %v1362_v31  ;;  %v1492_v42 = vmul.f32 %v776_v13, %v1380_v37  ;;  %v784_v56 = vmul.f32 %v776_v13, %v1335_v18 }
 0x1fb   : > { %643 = vrot.lane.b32.xlu0 %v631_v1, %s1199_s26  ;;  %v865_v3 = vpop.permute.xlu0 %864  ;;  %v566_v1 = vpack.c.bf16 %v560_v59, %v557_v63  ;;  %v782_v59 = vmul.f32 %v1423_v62, %v1329_v15 }
 0x1fc   : > { %v1445_v9 = vpop.permute.xlu1 %866  ;;  %v1473_v29 = vmul.f32 %v865_v3, %v1326_v14  ;;  %v1476_v30 = vmul.f32 %v865_v3, %v1332_v16  ;;  %v1506_v48 = vmul.f32 %v865_v3, %v1367_v33  ;;  %v796_v50 = vpack.c.bf16 %v1492_v42, %v1485_v40 }
 0x1fd   : > { %v869_v17 = vsel %vm868_vm6, %v865_v3, %v1445_v9  ;;  %512 = vrot.lane.b32.xlu1 %v1437_v4, %s1196_s21  ;;  %v1457_v21 = vmul.f32 %v1445_v9, %v1329_v15  ;;  %v1461_v23 = vmul.f32 %v1445_v9, %v1338_v19  ;;  %v1518_v53 = vmul.f32 %v865_v3, %v1370_v34 }
 0x1fe   : > { %v1464_v24 = vmul.f32 %v869_v17, %v1322_v11  ;;  %v1467_v25 = vmul.f32 %v869_v17, %v1335_v18  ;;  %v885_v41 = vpack.c.bf16 %v1476_v30, %v1473_v29  ;;  %v1495_v44 = vmul.f32 %v869_v17, %v1362_v31 }
 0x1ff   : > { %736 = vrot.lane.b32.xlu0 %v724_v10, %s1200_s27  ;;  %v887_v28 = vpack.c.bf16 %v1461_v23, %v1457_v21  ;;  %v1498_v46 = vmul.f32 %v869_v17, %v1380_v37  ;;  %v888_v58 = vpack.c.bf16 %v1518_v53, %v1506_v48  ;;  %v625_v3 = vmul.f32 %v1391_v43, %v1367_v33 }
 0x200   : > { %v886_v39 = vpack.c.bf16 %v1467_v25, %v1464_v24  ;;  %v1546_v10 = vsel %vm441_vm2, %v1356_v27, 0.0  ;;  %v721_v43 = vmul.f32 %v1407_v52, %v1370_v34  ;;  %v562_v27 = vmul.f32 %v1315_v6, %v1537_v0 }
 0x201   : > { %674 = vrot.lane.b32.xlu1 %v1437_v4, %s1197_s22  ;;  %v889_v51 = vpack.c.bf16 %v1498_v46, %v1495_v44  ;;  %v1551_v5 = vpack.c.bf16 %v1537_v0, %v1546_v10  ;;  %v634_v35 = vpack.c.bf16 %v628_v7, %v625_v3  ;;  %v558_v52 = vmul.f32 %v1432_v2, %v1362_v31 }
 0x202   : > { %v727_v17 = vpack.c.bf16 %v721_v43, %v718_v12  ;;  %v627_v63 = vmul.f32 %v1395_v45, %v1546_v10  ;;  %v626_v2 = vmul.f32 %v1443_v8, %v1362_v31  ;;  %v629_v15 = vmul.f32 %v1443_v8, %v1380_v37 }
 0x203   : > { %577 = vrot.lane.b32.xlu0 %v564_v26, %s1198_s23  ;;  %v559_v26 = vmul.f32 %v1315_v6, %v1546_v10  ;;  %v567_v57 = vpack.c.bf16 %v561_v32, %v558_v52  ;;  %v785_v6 = vmul.f32 %v1423_v62, %v1338_v19  ;;  %v786_v3 = vmul.f32 %v1421_v60, %v1367_v33 }
 0x204   : > { %v789_v7 = vmul.f32 %v1421_v60, %v1370_v34  ;;  %v719_v33 = vmul.f32 %v1503_v47, %v1362_v31  ;;  %v722_v34 = vmul.f32 %v1503_v47, %v1380_v37  ;;  %v1638_v37 = vld [vmem:[%s1708_s5] sm:$0xff]  ;;  %v884_v21 = vmul.f32 %v1445_v9, %v1537_v0 }
 0x205   : > { %514 = vrot.lane.b32.xlu1 %v1511_v49, %s1196_s21  ;;  %v568_v36 = vpack.c.bf16 %v562_v27, %v559_v26  ;;  %v794_v18 = vpack.c.bf16 %v785_v6, %v782_v59 }
 0x207   : > { %645 = vrot.lane.b32.xlu0 %v632_v55, %s1199_s26  ;;  %v781_v55 = vmul.f32 %v776_v13, %v1322_v11  ;;  %v630_v11 = vmul.f32 %v1395_v45, %v1537_v0  ;;  %v780_v13 = vmul.f32 %v1421_v60, %v1326_v14  ;;  %v635_v45 = vpack.c.bf16 %v629_v15, %v626_v2 }
 0x208   : > { %v720_v14 = vmul.f32 %v1409_v54, %v1546_v10 }
 0x209   : > { %676 = vrot.lane.b32.xlu1 %v1511_v49, %s1197_s22  ;;  %v636_v19 = vpack.c.bf16 %v630_v11, %v627_v63 }
 0x20b   : > { %738 = vrot.lane.b32.xlu0 %v725_v61, %s1200_s27  ;;  %v793_v61 = vpack.c.bf16 %v784_v56, %v781_v55 }
 0x20d   : > { %581 = vrot.lane.b32.xlu1 %v566_v1, %s1198_s23  ;;  %v783_v1 = vmul.f32 %v1421_v60, %v1332_v16  ;;  %v723_v16 = vmul.f32 %v1409_v54, %v1537_v0  ;;  %v788_v54 = vmul.f32 %v1423_v62, %v1546_v10  ;;  %v791_v60 = vmul.f32 %v1423_v62, %v1537_v0 }
 0x20e   : > { %v881_v62 = vmul.f32 %v1445_v9, %v1546_v10 }
 0x20f   : > { %516 = vrot.lane.b32.xlu0 %v1551_v5, %s1196_s21  ;;  %v792_v8 = vpack.c.bf16 %v783_v1, %v780_v13  ;;  %v797_v31 = vpack.c.bf16 %v791_v60, %v788_v54 }
 0x210   : > { %v890_v23 = vpack.c.bf16 %v884_v21, %v881_v62 }
 0x211   : > { %649 = vrot.lane.b32.xlu1 %v634_v35, %s1199_s26  ;;  %v795_v35 = vpack.c.bf16 %v789_v7, %v786_v3 }
 0x213   : > { %678 = vrot.lane.b32.xlu0 %v1551_v5, %s1197_s22 }
 0x215   : > { %742 = vrot.lane.b32.xlu1 %v727_v17, %s1200_s27 }
 0x217   : > { %585 = vrot.lane.b32.xlu0 %v568_v36, %s1198_s23 }
 0x219   : > { %583 = vrot.lane.b32.xlu1 %v567_v57, %s1198_s23 }
 0x21b   : > { %806 = vrot.lane.b32.xlu0 %v793_v61, %s1201_s28 }
 0x21d   : > { %808 = vrot.lane.b32.xlu1 %v794_v18, %s1201_s28 }
 0x21f   : > { %653 = vrot.lane.b32.xlu0 %v636_v19, %s1199_s26 }
 0x221   : > { %651 = vrot.lane.b32.xlu1 %v635_v45, %s1199_s26 }
 0x223   : > { %804 = vrot.lane.b32.xlu0 %v792_v8, %s1201_s28 }
 0x225   : > { %810 = vrot.lane.b32.xlu1 %v795_v35, %s1201_s28 }
 0x227   : > { %831 = vrot.lane.b32.xlu0 %v1384_v38, %s1202_s29  ;;  %v728_v38 = vpack.c.bf16 %v722_v34, %v719_v33 }
 0x229   : > { %833 = vrot.lane.b32.xlu1 %v1347_v22, %s1202_s29  ;;  %v729_v22 = vpack.c.bf16 %v723_v16, %v720_v14 }
 0x22b   : > { %899 = vrot.lane.b32.xlu0 %v886_v39, %s1203_s30 }
 0x22d   : > { %901 = vrot.lane.b32.xlu1 %v887_v28, %s1203_s30 }
 0x22f   : > { %746 = vrot.lane.b32.xlu0 %v729_v22, %s1200_s27 }
 0x231   : > { %744 = vrot.lane.b32.xlu1 %v728_v38, %s1200_s27 }
 0x233   : > { %829 = vrot.lane.b32.xlu0 %v1342_v20, %s1202_s29  ;;  %v1140_v20 = vcombine.high %v1638_v37, %v1638_v37 }
 0x235   : > { %897 = vrot.lane.b32.xlu1 %v885_v41, %s1203_s30  ;;  %1005 = vmatprep.mubr.bf16.mxu1 %v1140_v20 }
 0x237   : > { %814 = vrot.lane.b32.xlu0 %v797_v31, %s1201_s28 }
 0x239   : > { %812 = vrot.lane.b32.xlu1 %v796_v50, %s1201_s28 }
 0x23b   : > { %837 = vrot.lane.b32.xlu0 %v1511_v49, %s1202_s29 }
 0x23d   : > { %839 = vrot.lane.b32.xlu1 %v1551_v5, %s1202_s29 }
 0x23f   : > { %905 = vrot.lane.b32.xlu0 %v889_v51, %s1203_s30 }
 0x241   : > { %907 = vrot.lane.b32.xlu1 %v890_v23, %s1203_s30 }
 0x243   : > { %835 = vrot.lane.b32.xlu0 %v1437_v4, %s1202_s29 }
 0x245   : > { %903 = vrot.lane.b32.xlu1 %v888_v58, %s1203_s30 }
 0x259   : > { %v507_v24 = vpop.permute.xlu0 %506 }
 0x25a   : > { %v511_v25 = vpop.permute.xlu1 %510 }
 0x25d   : > { %v669_v9 = vpop.permute.xlu0 %668 }
 0x25e   : > { %v673_v28 = vpop.permute.xlu1 %672 }
 0x261   : > { %v509_v29 = vpop.permute.xlu0 %508 }
 0x262   : > { %v580_v30 = vpop.permute.xlu1 %579  ;;  %v520_v39 = vsel %vm518_vm8, %v509_v29, %v511_v25  ;;  %v519_v40 = vsel %vm518_vm8, %v507_v24, %v509_v29 }
 0x263   : > { %977 = vmatprep.subr.bf16.mxu1 %v520_v39 }
 0x264   : > { %978 = vmatpush1.bf16.msra.mxu1 %v519_v40 }
 0x265   : > { %v671_v41 = vpop.permute.xlu0 %670 }
 0x266   : > { %v682_v13 = vsel %vm680_vm11, %v671_v41, %v673_v28  ;;  %v681_v3 = vsel %vm680_vm11, %v669_v9, %v671_v41 }
 0x267   : > { %v648_v42 = vpop.permute.xlu1 %647 }
 0x269   : > { %v576_v4 = vpop.permute.xlu0 %575 }
 0x26b   : > { %v741_v44 = vpop.permute.xlu1 %740 }
 0x26d   : > { %v644_v46 = vpop.permute.xlu0 %643 }
 0x26f   : > { %v513_v47 = vpop.permute.xlu1 %512 }
 0x271   : > { %v1660_v48 = vpop.permute.xlu0 %736 }
 0x273   : > { %v675_v49 = vpop.permute.xlu1 %674 }
 0x275   : > { %v578_v50 = vpop.permute.xlu0 %577 }
 0x276   : > { %v589_v17 = vsel %vm587_vm9, %v578_v50, %v580_v30  ;;  %v588_v36 = vsel %vm587_vm9, %v576_v4, %v578_v50 }
 0x277   : > { %v515_v51 = vpop.permute.xlu1 %514 }
 0x278   : > { %v521_v27 = vsel %vm518_vm8, %v513_v47, %v515_v51 }
 0x279   : > { %v646_v53 = vpop.permute.xlu0 %645 }
 0x27a   : > { %v657_v6 = vsel %vm655_vm10, %v646_v53, %v648_v42  ;;  %v656_v11 = vsel %vm655_vm10, %v644_v46, %v646_v53  ;;  %v1180_v53 = vld [vmem:[%s1708_s5 + $0x8] ss:$0 sps:$4 sm:$0xff]  }
 0x27b   : > { %v677_v58 = vpop.permute.xlu1 %676 }
 0x27c   : > { %v683_v14 = vsel %vm680_vm11, %v675_v49, %v677_v58  ;;  %v1139_v49 = vcombine.low %v1638_v37, %v1638_v37 }
 0x27d   : > { %v739_v0 = vpop.permute.xlu0 %738 }
 0x27e   : > { %v750_v16 = vsel %vm748_vm12, %v739_v0, %v741_v44  ;;  %v749_v38 = vsel %vm748_vm12, %v1660_v48, %v739_v0 }
 0x27f   : > { %v582_v10 = vpop.permute.xlu1 %581 }
 0x281   : > { %v517_v5 = vpop.permute.xlu0 %516 }
 0x282   : > { %v522_v12 = vsel %vm518_vm8, %v515_v51, %v517_v5 }
 0x283   : > { %v650_v43 = vpop.permute.xlu1 %649  ;;  %979 = vmatprep.subr.bf16.mxu1 %v522_v12 }
 0x284   : > { %980 = vmatpush1.bf16.msra.mxu1 %v521_v27 }
 0x285   : > { %981 = vmatprep.subr.bf16.mxu1 %v589_v17  ;;  %v679_v26 = vpop.permute.xlu0 %678 }
 0x286   : > { %v684_v7 = vsel %vm680_vm11, %v677_v58, %v679_v26 }
 0x287   : > { %v743_v32 = vpop.permute.xlu1 %742 }
 0x288   : > { %982 = vmatpush1.bf16.msra.mxu1 %v588_v36 }
 0x289   : > { %v586_v52 = vpop.permute.xlu0 %585 }
 0x28b   : > { %v584_v55 = vpop.permute.xlu1 %583 }
 0x28c   : > { %v591_v56 = vsel %vm587_vm9, %v584_v55, %v586_v52  ;;  %v590_v57 = vsel %vm587_vm9, %v582_v10, %v584_v55 }
 0x28d   : > { %983 = vmatprep.subr.bf16.mxu1 %v591_v56  ;;  %v807_v59 = vpop.permute.xlu0 %806 }
 0x28e   : > { %984 = vmatpush1.bf16.msra.mxu1 %v590_v57 }
 0x28f   : > { %v809_v61 = vpop.permute.xlu1 %808  ;;  %985 = vmatprep.subr.bf16.mxu1 %v657_v6 }
 0x290   : > { %v818_v62 = vsel %vm816_vm14, %v807_v59, %v809_v61 }
 0x291   : > { %v654_v63 = vpop.permute.xlu0 %653 }
 0x292   : > { %986 = vmatpush1.bf16.msra.mxu1 %v656_v11 }
 0x293   : > { %v652_v18 = vpop.permute.xlu1 %651 }
 0x294   : > { %v659_v2 = vsel %vm655_vm10, %v652_v18, %v654_v63  ;;  %v658_v15 = vsel %vm655_vm10, %v650_v43, %v652_v18 }
 0x295   : > { %987 = vmatprep.subr.bf16.mxu1 %v659_v2  ;;  %v805_v19 = vpop.permute.xlu0 %804 }
 0x296   : > { %988 = vmatpush1.bf16.msra.mxu1 %v658_v15  ;;  %v817_v25 = vsel %vm816_vm14, %v805_v19, %v807_v59 }
 0x297   : > { %v811_v1 = vpop.permute.xlu1 %810  ;;  %989 = vmatprep.subr.bf16.mxu1 %v682_v13 }
 0x299   : > { %v832_v45 = vpop.permute.xlu0 %831 }
 0x29a   : > { %990 = vmatpush1.bf16.msra.mxu1 %v681_v3 }
 0x29b   : > { %v834_v8 = vpop.permute.xlu1 %833  ;;  %991 = vmatprep.subr.bf16.mxu1 %v684_v7 }
 0x29c   : > { %v843_v39 = vsel %vm841_vm15, %v832_v45, %v834_v8 }
 0x29d   : > { %v900_v35 = vpop.permute.xlu0 %899 }
 0x29e   : > { %992 = vmatpush1.bf16.msra.mxu1 %v683_v14 }
 0x29f   : > { %v902_v33 = vpop.permute.xlu1 %901  ;;  %993 = vmatprep.subr.bf16.mxu1 %v750_v16 }
 0x2a0   : > { %v911_v34 = vsel %vm909_vm13, %v900_v35, %v902_v33 }
 0x2a1   : > { %1014 = vmatprep.subr.bf16.mxu0 %v911_v34  ;;  %v747_v22 = vpop.permute.xlu0 %746 }
 0x2a2   : > { %994 = vmatpush1.bf16.msra.mxu1 %v749_v38 }
 0x2a3   : > { %v745_v54 = vpop.permute.xlu1 %744 }
 0x2a4   : > { %v752_v60 = vsel %vm748_vm12, %v745_v54, %v747_v22  ;;  %v751_v31 = vsel %vm748_vm12, %v743_v32, %v745_v54 }
 0x2a5   : > { %995 = vmatprep.subr.bf16.mxu1 %v752_v60  ;;  %v830_v20 = vpop.permute.xlu0 %829 }
 0x2a6   : > { %996 = vmatpush1.bf16.msra.mxu1 %v751_v31  ;;  %v842_v42 = vsel %vm841_vm15, %v830_v20, %v832_v45 }
 0x2a7   : > { %v898_v21 = vpop.permute.xlu1 %897  ;;  %997 = vmatprep.subr.bf16.mxu1 %v818_v62 }
 0x2a8   : > { %v910_v23 = vsel %vm909_vm13, %v898_v21, %v900_v35 }
 0x2a9   : > { %1015 = vmatpush1.bf16.msra.mxu0 %v910_v23  ;;  %v815_v24 = vpop.permute.xlu0 %814 }
 0x2aa   : > { %998 = vmatpush1.bf16.msra.mxu1 %v817_v25 }
 0x2ab   : > { %v813_v9 = vpop.permute.xlu1 %812 }
 0x2ac   : > { %v820_v28 = vsel %vm816_vm14, %v813_v9, %v815_v24  ;;  %v819_v29 = vsel %vm816_vm14, %v811_v1, %v813_v9 }
 0x2ad   : > { %999 = vmatprep.subr.bf16.mxu1 %v820_v28  ;;  %v838_v30 = vpop.permute.xlu0 %837 }
 0x2ae   : > { %1000 = vmatpush1.bf16.msra.mxu1 %v819_v29 }
 0x2af   : > { %v840_v40 = vpop.permute.xlu1 %839  ;;  %1001 = vmatprep.subr.bf16.mxu1 %v843_v39 }
 0x2b0   : > { %v845_v4 = vsel %vm841_vm15, %v838_v30, %v840_v40 }
 0x2b1   : > { %v906_v41 = vpop.permute.xlu0 %905 }
 0x2b2   : > { %1002 = vmatpush1.bf16.msra.mxu1 %v842_v42 }
 0x2b3   : > { %v908_v44 = vpop.permute.xlu1 %907  ;;  %1003 = vmatprep.subr.bf16.mxu1 %v845_v4 }
 0x2b4   : > { %v913_v46 = vsel %vm909_vm13, %v906_v41, %v908_v44 }
 0x2b5   : > { %1016 = vmatprep.subr.bf16.mxu0 %v913_v46  ;;  %v836_v47 = vpop.permute.xlu0 %835 }
 0x2b6   : > { %v844_v48 = vsel %vm841_vm15, %v836_v47, %v838_v30 }
 0x2b7   : > { %v904_v50 = vpop.permute.xlu1 %903  ;;  %1004 = vmatpush1.bf16.msra.mxu1 %v844_v48 }
 0x2b8   : > { %v912_v51 = vsel %vm909_vm13, %v904_v50, %v906_v41 }
 0x2b9   : > { %1017 = vmatpush1.bf16.msra.mxu0 %v912_v51 }
 0x2ba   : > { %1006 = vmatmul.mubr.bf16.vlgmr.msra.gmra.mrb[0].mxu1 %v1139_v49 }
 0x2bc   : > { %1142 = vmatmul.mubr.msk.bf16.vlgmr.msra.gmra.mrb[8].mxu0 %vm775_vm5, %v1180_v53 }
 0x38d   : > { %v1007_v58 = vpop.f32.mrb[0].mxu1 }
 0x38e   : > { %v1009_v0 = vpop.f32.mrb[1].mxu1 }
 0x38f   : > { %v1048_v37 = vpop.f32.mrb[8].mxu0  ;;  %v1011_v10 = vpop.f32.mrb[2].mxu1 }
 0x390   : > { %v1049_v5 = vadd.f32 %v1048_v37, %v1007_v58  ;;  %v1050_v12 = vpop.f32.mrb[9].mxu0  ;;  %v1012_v43 = vpop.f32.mrb[3].mxu1 }
 0x391   : > { %v1051_v27 = vadd.f32 %v1050_v12, %v1009_v0  ;;  %v1052_v17 = vpop.f32.mrb[10].mxu0 }
 0x392   : > { %1143 = vst [vmem:[%s1092_s14 + $0x10] sm:$0xff] %v1049_v5  ;;  %v1053_v26 = vpop.f32.mrb[11].mxu0 }
 0x393   : > { %1144 = vst [vmem:[%s1092_s14 + $0x18] sm:$0xff] %v1051_v27 }
 0x394 PF: > { %s17_s24 = sadd.s32 1, %s1187_s24  }
 0x395   : > { %p14_p4 = scmp.ge.s32.totalorder %s17_s24, 4  }
 0x397   :  { %16 = sbr.rel (!%p14_p4) target bundleno = 1 (0x1), region = 79 }

</bundles_post_ra>
